<compile_context>
chip_gen: v7x
topology: tpu7x:2x2x1
jax: 0.10.0
libtpu: 0.0.40
codegen_flags: <defaults>
</compile_context>

<pallas_src>
import functools

import jax
import jax.numpy as jnp
from jax.experimental import pallas as pl
from jax.experimental.pallas import tpu as pltpu

D_MODEL = 128   # lane-dense stand-in for 512 (multiple of 128)
D_FF = 256      # lane-dense stand-in for 2048 (multiple of 128)
LN_EPS = 1e-5


def ffn_kernel(x_ref, w1_ref, b1_ref, w2_ref, b2_ref, g_ref, beta_ref, o_ref, acc_ref):
    # Grid: (row tiles, d_ff chunks).  d_ff chunk axis is the fast/inner axis.
    k = pl.program_id(1)

    @pl.when(k == 0)
    def _():
        acc_ref[...] = jnp.zeros_like(acc_ref)

    # Read the x tile once; bf16 MXU operand derived from the same load.
    x_f32 = x_ref[...]                          # (tm, D) f32: residual / LayerNorm path
    x_bf = x_f32.astype(jnp.bfloat16)           # MXU input

    # conv1 (1x1) chunk + ReLU: relu(x @ W1[:, blk] + b1[blk]), f32 accumulation on the MXU.
    h = jnp.dot(x_bf, w1_ref[...], preferred_element_type=jnp.float32)
    h = jnp.maximum(h + b1_ref[...], 0.0)

    # conv2 (1x1) chunk: accumulate h_blk @ W2[blk, :] into the (tm, D) f32 accumulator.
    acc_ref[...] += jnp.dot(h.astype(jnp.bfloat16), w2_ref[...],
                            preferred_element_type=jnp.float32)

    @pl.when(k == pl.num_programs(1) - 1)
    def _():
        # bias + residual + LayerNorm over d_model.
        y = acc_ref[...] + b2_ref[...] + x_f32
        mean = jnp.mean(y, axis=-1, keepdims=True)
        centered = y - mean
        # Two-pass variance: always >= 0, no cancellation issues after the residual add.
        var = jnp.mean(centered * centered, axis=-1, keepdims=True)
        y_norm = centered * jax.lax.rsqrt(var + LN_EPS)
        # Padded tail rows (M % tm != 0) normalize garbage; harmless because LN is strictly
        # per-row and Pallas masks their writeback.
        o_ref[...] = (y_norm * g_ref[...] + beta_ref[...]).astype(o_ref.dtype)


def _round_up(x, m):
    return ((x + m - 1) // m) * m


def _device_tuning():
    """(num_tensorcores, row-tile cap, vmem_limit_bytes) for the local TPU generation."""
    kind = ""
    try:
        kind = jax.devices()[0].device_kind.lower()
    except Exception:  # pragma: no cover - defensive; assume single-TC defaults
        pass
    if "v7" in kind:
        # 2 TensorCores/chip, 64 MiB VMEM/TC: keep tm moderate, leave scheduler headroom.
        return 2, 512, 48 * 1024 * 1024
    if "v5" in kind or "v6" in kind:
        # Single TensorCore, 128 MiB VMEM: big row tiles, explicit high limit
        # (v5e's default scoped limit is only 16 MiB).
        return 1, 1024, 96 * 1024 * 1024
    # Unknown generation: conservative defaults, let the compiler pick the VMEM limit.
    return 1, 512, None


def _pick_dff_chunk(d_ff):
    # Largest lane-dense chunk <= 512 that divides d_ff (falls back to full d_ff).
    for cand in (512, 256, 128):
        if d_ff % cand == 0:
            return cand
    return d_ff


@jax.jit
def poswise_feed_forward(x, w1, b1, w2, b2, gamma, beta):
    """x: (B, S, d_model) -> (B, S, d_model)."""
    B, S, D = x.shape
    D_ff = w1.shape[1]
    M = B * S
    x2d = x.reshape(M, D)

    num_tc, tm_cap, vmem_limit = _device_tuning()

    # bf16 weights for the MXU (halves weight HBM traffic); vectors stay f32.
    w1_bf = w1.astype(jnp.bfloat16)
    w2_bf = w2.astype(jnp.bfloat16)
    b1_2d = b1.reshape(1, D_ff).astype(jnp.float32)
    b2_2d = b2.reshape(1, D).astype(jnp.float32)
    g_2d = gamma.reshape(1, D).astype(jnp.float32)
    be_2d = beta.reshape(1, D).astype(jnp.float32)

    # Row-tile selection (shapes are static under jit):
    #   - as large as the generation's VMEM budget sensibly allows (amortizes the ~0.35us
    #     per-grid-step overhead; HBM-bound at these dims),
    #   - multiple of 8 (f32 sublane),
    #   - only on 2-TensorCore parts (v7x): force >= 2 balanced grid iterations so both
    #     cores get work, 256-row aligned where M permits to keep the MXU M-cadence full.
    tm_eff = max(8, (min(tm_cap, _round_up(M, 8)) // 8) * 8)
    if num_tc >= 2 and M > 8 and pl.cdiv(M, tm_eff) < 2:
        align = 256 if M >= 512 else 8
        tm_eff = max(8, _round_up(pl.cdiv(M, 2), align))

    tff = _pick_dff_chunk(D_ff)
    grid = (pl.cdiv(M, tm_eff), D_ff // tff)

    bytes_accessed = (
        M * D * x.dtype.itemsize            # x
        + M * D * x.dtype.itemsize          # out
        + D * D_ff * 2                      # W1 (bf16)
        + D_ff * D * 2                      # W2 (bf16)
        + (D_ff + 3 * D) * 4                # b1, b2, gamma, beta
    )
    cost = pl.CostEstimate(
        flops=4 * M * D * D_ff,             # two GEMMs
        transcendentals=M,                  # one rsqrt per row
        bytes_accessed=bytes_accessed,
    )

    out2d = pl.pallas_call(
        ffn_kernel,
        out_shape=jax.ShapeDtypeStruct((M, D), x.dtype),
        grid_spec=pltpu.PrefetchScalarGridSpec(
            num_scalar_prefetch=0,
            grid=grid,
            in_specs=[
                pl.BlockSpec((tm_eff, D), lambda i, k: (i, 0)),   # x rows (resident over k)
                pl.BlockSpec((D, tff), lambda i, k: (0, k)),      # W1 d_ff chunk
                pl.BlockSpec((1, tff), lambda i, k: (0, k)),      # b1 chunk
                pl.BlockSpec((tff, D), lambda i, k: (k, 0)),      # W2 d_ff chunk
                pl.BlockSpec((1, D), lambda i, k: (0, 0)),        # b2 (constant)
                pl.BlockSpec((1, D), lambda i, k: (0, 0)),        # gamma (constant)
                pl.BlockSpec((1, D), lambda i, k: (0, 0)),        # beta (constant)
            ],
            out_specs=pl.BlockSpec((tm_eff, D), lambda i, k: (i, 0)),
            scratch_shapes=[pltpu.VMEM((tm_eff, D), jnp.float32)],   # f32 accumulator
        ),
        compiler_params=pltpu.CompilerParams(
            dimension_semantics=("parallel", "arbitrary"),
            vmem_limit_bytes=vmem_limit,
        ),
        cost_estimate=cost,
    )(x2d, w1_bf, b1_2d, w2_bf, b2_2d, g_2d, be_2d)

    return out2d.reshape(B, S, D)


def reference(x, w1, b1, w2, b2, gamma, beta):
    # Pure-f32 reference matching the PyTorch module's forward.
    h = jnp.maximum(jnp.einsum("bsd,df->bsf", x, w1) + b1, 0.0)
    y = jnp.einsum("bsf,fd->bsd", h, w2) + b2 + x
    mean = jnp.mean(y, axis=-1, keepdims=True)
    var = jnp.mean((y - mean) ** 2, axis=-1, keepdims=True)
    return (y - mean) / jnp.sqrt(var + LN_EPS) * gamma + beta


if __name__ == "__main__":
    key = jax.random.PRNGKey(0)
    k_x, k_w1, k_b1, k_w2, k_b2 = jax.random.split(key, 5)

    B, S = 2, 8
    x = jax.random.normal(k_x, (B, S, D_MODEL), dtype=jnp.float32)

    # Conv1d(d_model, d_ff, 1) weight is (d_ff, d_model, 1); stored here
    # pre-transposed as (d_model, d_ff) so the kernel does x @ W1.
    w1 = jax.random.normal(k_w1, (D_MODEL, D_FF), dtype=jnp.float32) * 0.05
    b1 = jax.random.normal(k_b1, (D_FF,), dtype=jnp.float32) * 0.05
    w2 = jax.random.normal(k_w2, (D_FF, D_MODEL), dtype=jnp.float32) * 0.05
    b2 = jax.random.normal(k_b2, (D_MODEL,), dtype=jnp.float32) * 0.05
    # LayerNorm default init (PyTorch): gamma = 1, beta = 0
    gamma = jnp.ones((D_MODEL,), dtype=jnp.float32)
    beta = jnp.zeros((D_MODEL,), dtype=jnp.float32)

    out = poswise_feed_forward(x, w1, b1, w2, b2, gamma, beta)
    out = jax.block_until_ready(out)

    ref = reference(x, w1, b1, w2, b2, gamma, beta)
    assert out.shape == x.shape
    # bf16 MXU inputs (f32 accumulate) vs the f32 reference -> slightly looser tolerance.
    assert jnp.allclose(out, ref, atol=2e-2, rtol=2e-2), "mismatch vs reference"

    print("KERNEL_OK")
</pallas_src>

<mosaic_0001>
module attributes {stable_mosaic.version = 11 : i64} {
  func.func @ffn_kernel(%arg0: i32, %arg1: i32, %arg2: memref<16x128xf32, #tpu.memory_space<vmem>>, %arg3: memref<128x256xbf16, #tpu.memory_space<vmem>>, %arg4: memref<1x256xf32, #tpu.memory_space<vmem>>, %arg5: memref<256x128xbf16, #tpu.memory_space<vmem>>, %arg6: memref<1x128xf32, #tpu.memory_space<vmem>>, %arg7: memref<1x128xf32, #tpu.memory_space<vmem>>, %arg8: memref<1x128xf32, #tpu.memory_space<vmem>>, %arg9: memref<16x128xf32, #tpu.memory_space<vmem>>, %arg10: memref<16x128xf32, #tpu.memory_space<vmem>>) attributes {dimension_semantics = [#tpu.dimension_semantics<parallel>, #tpu.dimension_semantics<arbitrary>], iteration_bounds = array<i64: 1, 1>, scalar_prefetch = 0 : i64, scratch_operands = 1 : i64, tpu.core_type = #tpu.core_type<tc>, window_params = [{transform_indices = @transform_0, window_bounds = array<i64: 16, 128>}, {transform_indices = @transform_1, window_bounds = array<i64: 128, 256>}, {transform_indices = @transform_2, window_bounds = array<i64: 1, 256>}, {transform_indices = @transform_3, window_bounds = array<i64: 256, 128>}, {pipeline_mode = #tpu.pipeline_mode<synchronous>, transform_indices = @transform_4, window_bounds = array<i64: 1, 128>}, {pipeline_mode = #tpu.pipeline_mode<synchronous>, transform_indices = @transform_5, window_bounds = array<i64: 1, 128>}, {pipeline_mode = #tpu.pipeline_mode<synchronous>, transform_indices = @transform_6, window_bounds = array<i64: 1, 128>}, {transform_indices = @transform_7, window_bounds = array<i64: 16, 128>}]} {
    %c0_i32 = arith.constant 0 : i32
    %0 = arith.cmpi eq, %arg1, %c0_i32 : i32
    %1 = arith.extui %0 : i1 to i32
    %c0_i32_0 = arith.constant 0 : i32
    %2 = arith.cmpi ne, %1, %c0_i32_0 : i32
    scf.if %2 {
      %cst_16 = arith.constant 0.000000e+00 : f32
      %21 = vector.broadcast %cst_16 : f32 to vector<16x128xf32>
      %c0_17 = arith.constant 0 : index
      %c0_18 = arith.constant 0 : index
      %22 = vector.load %arg10[%c0_17, %c0_18] : memref<16x128xf32, #tpu.memory_space<vmem>>, vector<16x128xf32>
      tpu.vector_store %arg10[%c0_17, %c0_18], %21 {strides = array<i32>} : memref<16x128xf32, #tpu.memory_space<vmem>>, vector<16x128xf32>,
    } else {
    }
    %c0 = arith.constant 0 : index
    %c0_1 = arith.constant 0 : index
    %3 = vector.load %arg2[%c0, %c0_1] : memref<16x128xf32, #tpu.memory_space<vmem>>, vector<16x128xf32>
    %4 = arith.truncf %3 : vector<16x128xf32> to vector<16x128xbf16>
    %c0_2 = arith.constant 0 : index
    %c0_3 = arith.constant 0 : index
    %5 = vector.load %arg3[%c0_2, %c0_3] : memref<128x256xbf16, #tpu.memory_space<vmem>>, vector<128x256xbf16>
    %cst = arith.constant dense<0.000000e+00> : vector<16x256xf32>
    %6 = tpu.matmul %4, %5, %cst {dimension_numbers = #tpu.dot_dimension_numbers<[1], [0], [0], [1], [0, 0, 1, 1], [], []>} : vector<16x128xbf16>, vector<128x256xbf16>, vector<16x256xf32> -> vector<16x256xf32>
    %c0_4 = arith.constant 0 : index
    %c0_5 = arith.constant 0 : index
    %7 = vector.load %arg4[%c0_4, %c0_5] : memref<1x256xf32, #tpu.memory_space<vmem>>, vector<1x256xf32>
    %8 = vector.broadcast %7 : vector<1x256xf32> to vector<16x256xf32>
    %9 = arith.addf %6, %8 : vector<16x256xf32>
    %cst_6 = arith.constant 0.000000e+00 : f32
    %10 = vector.broadcast %cst_6 : f32 to vector<16x256xf32>
    %11 = arith.maximumf %9, %10 : vector<16x256xf32>
    %c0_7 = arith.constant 0 : index
    %c0_8 = arith.constant 0 : index
    %12 = vector.load %arg10[%c0_7, %c0_8] : memref<16x128xf32, #tpu.memory_space<vmem>>, vector<16x128xf32>
    %13 = arith.truncf %11 : vector<16x256xf32> to vector<16x256xbf16>
    %c0_9 = arith.constant 0 : index
    %c0_10 = arith.constant 0 : index
    %14 = vector.load %arg5[%c0_9, %c0_10] : memref<256x128xbf16, #tpu.memory_space<vmem>>, vector<256x128xbf16>
    %cst_11 = arith.constant dense<0.000000e+00> : vector<16x128xf32>
    %15 = tpu.matmul %13, %14, %cst_11 {dimension_numbers = #tpu.dot_dimension_numbers<[1], [0], [0], [1], [0, 0, 1, 1], [], []>} : vector<16x256xbf16>, vector<256x128xbf16>, vector<16x128xf32> -> vector<16x128xf32>
    %16 = arith.addf %12, %15 : vector<16x128xf32>
    %c0_12 = arith.constant 0 : index
    %c0_13 = arith.constant 0 : index
    %17 = vector.load %arg10[%c0_12, %c0_13] : memref<16x128xf32, #tpu.memory_space<vmem>>, vector<16x128xf32>
    tpu.vector_store %arg10[%c0_12, %c0_13], %16 {strides = array<i32>} : memref<16x128xf32, #tpu.memory_space<vmem>>, vector<16x128xf32>,
    %c0_i32_14 = arith.constant 0 : i32
    %18 = arith.cmpi eq, %arg1, %c0_i32_14 : i32
    %19 = arith.extui %18 : i1 to i32
    %c0_i32_15 = arith.constant 0 : i32
    %20 = arith.cmpi ne, %19, %c0_i32_15 : i32
    scf.if %20 {
      %c0_16 = arith.constant 0 : index
      %c0_17 = arith.constant 0 : index
      %21 = vector.load %arg10[%c0_16, %c0_17] : memref<16x128xf32, #tpu.memory_space<vmem>>, vector<16x128xf32>
      %c0_18 = arith.constant 0 : index
      %c0_19 = arith.constant 0 : index
      %22 = vector.load %arg6[%c0_18, %c0_19] : memref<1x128xf32, #tpu.memory_space<vmem>>, vector<1x128xf32>
      %23 = vector.broadcast %22 : vector<1x128xf32> to vector<16x128xf32>
      %24 = arith.addf %21, %23 : vector<16x128xf32>
      %25 = arith.addf %24, %3 : vector<16x128xf32>
      %cst_20 = arith.constant dense<0.000000e+00> : vector<16xf32>
      %26 = vector.multi_reduction <add>, %25, %cst_20 [1] : vector<16x128xf32> to vector<16xf32>
      %27 = vector.shape_cast %26 : vector<16xf32> to vector<16x1xf32>
      %cst_21 = arith.constant 1.280000e+02 : f32
      %28 = vector.broadcast %cst_21 : f32 to vector<16x1xf32>
      %29 = arith.divf %27, %28 : vector<16x1xf32>
      %30 = vector.broadcast %29 : vector<16x1xf32> to vector<16x128xf32>
      %31 = arith.subf %25, %30 : vector<16x128xf32>
      %32 = arith.mulf %31, %31 : vector<16x128xf32>
      %cst_22 = arith.constant dense<0.000000e+00> : vector<16xf32>
      %33 = vector.multi_reduction <add>, %32, %cst_22 [1] : vector<16x128xf32> to vector<16xf32>
      %34 = vector.shape_cast %33 : vector<16xf32> to vector<16x1xf32>
      %cst_23 = arith.constant 1.280000e+02 : f32
      %35 = vector.broadcast %cst_23 : f32 to vector<16x1xf32>
      %36 = arith.divf %34, %35 : vector<16x1xf32>
      %cst_24 = arith.constant 9.99999974E-6 : f32
      %37 = vector.broadcast %cst_24 : f32 to vector<16x1xf32>
      %38 = arith.addf %36, %37 : vector<16x1xf32>
      %39 = math.rsqrt %38 : vector<16x1xf32>
      %40 = vector.broadcast %39 : vector<16x1xf32> to vector<16x128xf32>
      %41 = arith.mulf %31, %40 : vector<16x128xf32>
      %c0_25 = arith.constant 0 : index
      %c0_26 = arith.constant 0 : index
      %42 = vector.load %arg7[%c0_25, %c0_26] : memref<1x128xf32, #tpu.memory_space<vmem>>, vector<1x128xf32>
      %43 = vector.broadcast %42 : vector<1x128xf32> to vector<16x128xf32>
      %44 = arith.mulf %41, %43 : vector<16x128xf32>
      %c0_27 = arith.constant 0 : index
      %c0_28 = arith.constant 0 : index
      %45 = vector.load %arg8[%c0_27, %c0_28] : memref<1x128xf32, #tpu.memory_space<vmem>>, vector<1x128xf32>
      %46 = vector.broadcast %45 : vector<1x128xf32> to vector<16x128xf32>
      %47 = arith.addf %44, %46 : vector<16x128xf32>
      %c0_29 = arith.constant 0 : index
      %c0_30 = arith.constant 0 : index
      %48 = vector.load %arg9[%c0_29, %c0_30] : memref<16x128xf32, #tpu.memory_space<vmem>>, vector<16x128xf32>
      tpu.vector_store %arg9[%c0_29, %c0_30], %47 {strides = array<i32>} : memref<16x128xf32, #tpu.memory_space<vmem>>, vector<16x128xf32>,
    } else {
    }
    return
  }
  func.func @transform_0(%arg0: i32, %arg1: i32) -> (i32, i32) {
    %c0_i32 = arith.constant 0 : i32
    %c0_i32_0 = arith.constant 0 : i32
    return %arg0, %c0_i32 : i32, i32
  }
  func.func @transform_1(%arg0: i32, %arg1: i32) -> (i32, i32) {
    %c0_i32 = arith.constant 0 : i32
    %c0_i32_0 = arith.constant 0 : i32
    return %c0_i32, %arg1 : i32, i32
  }
  func.func @transform_2(%arg0: i32, %arg1: i32) -> (i32, i32) {
    %c0_i32 = arith.constant 0 : i32
    %c0_i32_0 = arith.constant 0 : i32
    return %c0_i32, %arg1 : i32, i32
  }
  func.func @transform_3(%arg0: i32, %arg1: i32) -> (i32, i32) {
    %c0_i32 = arith.constant 0 : i32
    %c0_i32_0 = arith.constant 0 : i32
    return %arg1, %c0_i32 : i32, i32
  }
  func.func @transform_4(%arg0: i32, %arg1: i32) -> (i32, i32) {
    %c0_i32 = arith.constant 0 : i32
    %c0_i32_0 = arith.constant 0 : i32
    %c0_i32_1 = arith.constant 0 : i32
    return %c0_i32, %c0_i32_0 : i32, i32
  }
  func.func @transform_5(%arg0: i32, %arg1: i32) -> (i32, i32) {
    %c0_i32 = arith.constant 0 : i32
    %c0_i32_0 = arith.constant 0 : i32
    %c0_i32_1 = arith.constant 0 : i32
    return %c0_i32, %c0_i32_0 : i32, i32
  }
  func.func @transform_6(%arg0: i32, %arg1: i32) -> (i32, i32) {
    %c0_i32 = arith.constant 0 : i32
    %c0_i32_0 = arith.constant 0 : i32
    %c0_i32_1 = arith.constant 0 : i32
    return %c0_i32, %c0_i32_0 : i32, i32
  }
  func.func @transform_7(%arg0: i32, %arg1: i32) -> (i32, i32) {
    %c0_i32 = arith.constant 0 : i32
    %c0_i32_0 = arith.constant 0 : i32
    return %arg0, %c0_i32 : i32, i32
  }
}

</mosaic_0001>

<bundles_post_ra>
// kernel: poswise_feed_forward.1
= control target key start
LH: loop header
LB: loop body
LE: loop exit
PB: predicated region body
PF: predicated region fallthrough
CT: control target
= control target key end

     0   :  { %v573_v2 = vmov 0   ;;  %s743_s0 = inlined_call_operand.vmem [shape: f32[16,128], index: 0, kind: input, shape index: {}]   ;;  %s744_s1 = inlined_call_operand.vmem [shape: bf16[128,256], index: 1, kind: input, shape index: {}]   ;;  %s745_s2 = inlined_call_operand.vmem [shape: f32[1,256], index: 2, kind: input, shape index: {}]   ;;  %s746_s3 = inlined_call_operand.vmem [shape: bf16[256,128], index: 3, kind: input, shape index: {}]   ;;  %s747_s4 = inlined_call_operand.vmem [shape: f32[1,128], index: 4, kind: input, shape index: {}]   ;;  %s748_s5 = inlined_call_operand.vmem [shape: f32[1,128], index: 5, kind: input, shape index: {}]   ;;  %s749_s6 = inlined_call_operand.vmem [shape: f32[1,128], index: 6, kind: input, shape index: {}]   ;;  %s750_s7 = inlined_call_operand.hbm [shape: f32[16,128], index: 7, kind: output, shape index: {}]  }
   0x1   :  { %v505_v0 = vld [vmem:[%s744_s1 + $0x4] ss:$8 sps:$4 sm:$0xff]   ;;  %v507_v1 = vld [vmem:[%s744_s1] ss:$8 sps:$4 sm:$0xff]   ;;  %177 = vmatprep.mubr.bf16.mxu0 %v573_v2  ;;  %v508_v3 = vld [vmem:[%s744_s1 + $0x14] ss:$8 sps:$4 sm:$0xff]  }
   0x2   :  { %145 = vmatprep.subr.bf16.mxu0 %v505_v0  ;;  %v510_v4 = vld [vmem:[%s744_s1 + $0x10] ss:$8 sps:$4 sm:$0xff]   ;;  %v511_v5 = vld [vmem:[%s744_s1 + $0x24] ss:$8 sps:$4 sm:$0xff]   ;;  %v513_v6 = vld [vmem:[%s744_s1 + $0x20] ss:$8 sps:$4 sm:$0xff]  }
   0x3   :  { %146 = vmatpush1.bf16.msra.mxu0 %v507_v1  ;;  %v514_v7 = vld [vmem:[%s744_s1 + $0x34] ss:$8 sps:$4 sm:$0xff]   ;;  %v516_v8 = vld [vmem:[%s744_s1 + $0x30] ss:$8 sps:$4 sm:$0xff]   ;;  %v517_v9 = vld [vmem:[%s744_s1 + $0x44] ss:$8 sps:$4 sm:$0xff]  }
   0x4   :  { %147 = vmatprep.subr.bf16.mxu0 %v508_v3  ;;  %v529_v10 = vld [vmem:[%s746_s3 + $0x40] sm:$0xff]   ;;  %v520_v13 = vld [vmem:[%s744_s1 + $0x54] ss:$8 sps:$4 sm:$0xff]   ;;  %v531_v14 = vld [vmem:[%s746_s3 + $0x48] sm:$0xff]  }
   0x5   :  { %v519_v11 = vld [vmem:[%s744_s1 + $0x40] ss:$8 sps:$4 sm:$0xff]   ;;  %479 = vmatprep.subr.bf16.mxu1 %v529_v10  ;;  %v533_v16 = vld [vmem:[%s746_s3 + $0x50] sm:$0xff]   ;;  %v523_v18 = vld [vmem:[%s744_s1 + $0x64] ss:$8 sps:$4 sm:$0xff]  }
   0x6   :  { %v530_v12 = vld [vmem:[%s746_s3] sm:$0xff]   ;;  %v532_v15 = vld [vmem:[%s746_s3 + $0x8] sm:$0xff]   ;;  %v522_v17 = vld [vmem:[%s744_s1 + $0x50] ss:$8 sps:$4 sm:$0xff]  }
   0x7   :  { %148 = vmatpush1.bf16.msra.mxu0 %v510_v4  ;;  %480 = vmatpush3.bf16.msra.mxu1 %v530_v12  ;;  %v534_v19 = vld [vmem:[%s746_s3 + $0x10] sm:$0xff]   ;;  %v535_v20 = vld [vmem:[%s746_s3 + $0x58] sm:$0xff]   ;;  %v525_v21 = vld [vmem:[%s744_s1 + $0x60] ss:$8 sps:$4 sm:$0xff]  }
   0x8   :  { %149 = vmatprep.subr.bf16.mxu0 %v511_v5  ;;  %481 = vmatprep.subr.bf16.mxu1 %v531_v14  ;;  %v526_v22 = vld [vmem:[%s744_s1 + $0x74] ss:$8 sps:$4 sm:$0xff]   ;;  %v537_v24 = vld [vmem:[%s746_s3 + $0x60] sm:$0xff]   ;;  %v528_v25 = vld [vmem:[%s744_s1 + $0x70] ss:$8 sps:$4 sm:$0xff]  }
   0x9   :  { %v536_v23 = vld [vmem:[%s746_s3 + $0x18] sm:$0xff]  }
   0xb   :  { %150 = vmatpush1.bf16.msra.mxu0 %v513_v6  ;;  %482 = vmatpush3.bf16.msra.mxu1 %v532_v15 }
   0xc   :  { %151 = vmatprep.subr.bf16.mxu0 %v514_v7  ;;  %483 = vmatprep.subr.bf16.mxu1 %v533_v16 }
   0xf   :  { %152 = vmatpush1.bf16.msra.mxu0 %v516_v8  ;;  %484 = vmatpush3.bf16.msra.mxu1 %v534_v19 }
  0x10   :  { %153 = vmatprep.subr.bf16.mxu0 %v517_v9  ;;  %485 = vmatprep.subr.bf16.mxu1 %v535_v20 }
  0x13   :  { %154 = vmatpush1.bf16.msra.mxu0 %v519_v11 }
  0x14   :  { %155 = vmatprep.subr.bf16.mxu0 %v520_v13 }
  0x17   :  { %156 = vmatpush1.bf16.msra.mxu0 %v522_v17 }
  0x18   :  { %157 = vmatprep.subr.bf16.mxu0 %v523_v18 }
  0x19   :  { %12 = vsyncpa [#allocation4], 0  ;;  %v34_v26 = vld [vmem:[%s743_s0] sm:$0xff]  ;;  %v35_v27 = vld [vmem:[%s743_s0 + $0x8] sm:$0xff]  ;;  %486 = vmatpush3.bf16.msra.mxu1 %v536_v23  ;;  %v55_v36 = vlaneseq  ;;  %s574_s26 = smov [#allocation3]  }
  0x1a   :  { %v538_v28 = vld [vmem:[%s746_s3 + $0x20] sm:$0xff]   ;;  %487 = vmatprep.subr.bf16.mxu1 %v537_v24  ;;  %v539_v29 = vld [vmem:[%s746_s3 + $0x68] sm:$0xff]   ;;  %v36_v30 = vpack.c.bf16 %v35_v27, %v34_v26  ;;  %v541_v32 = vld [vmem:[%s746_s3 + $0x70] sm:$0xff]   ;;  %s433_s27 = sshll.u32 %s574_s26, 4  ;;  %s434_s27 = int_to_ptr.vmem [resolvable:$true] %s433_s27 }
  0x1b   :  { %158 = vmatpush1.bf16.msra.mxu0 %v525_v21  ;;  %v540_v31 = vld [vmem:[%s746_s3 + $0x28] sm:$0xff]   ;;  %v542_v33 = vld [vmem:[%s746_s3 + $0x30] sm:$0xff]   ;;  %v543_v34 = vld [vmem:[%s746_s3 + $0x78] sm:$0xff]   ;;  %v56_v37 = vshrl.u32 %v55_v36, 7  ;;  %s549_s28 = scalar_lea.vmem %s434_s27, 256  ;;  %p554_p1 = scmp.lt.s32.totalorder %s434_s27, %s434_s27 }
  0x1c   :  { %159 = vmatprep.subr.bf16.mxu0 %v526_v22  ;;  %v544_v35 = vld [vmem:[%s746_s3 + $0x38] sm:$0xff]   ;;  %v53_v39 = vld [vmem:[%s745_s2] sm:$0x3]  ;;  %p550_p0 = scmp.ne.s32.totalorder %s434_s27, %s549_s28  ;;  %p555_p2 = scmp.lt.s32.totalorder %s549_s28, %s549_s28 }
  0x1d   :  { %488 = vmatpush3.bf16.msra.mxu1 %v538_v28  ;;  %v57_v38 = vsub.s32 0, %v56_v37  ;;  %v61_v40 = vsub.s32 1, %v56_v37  ;;  %v476_v59 = vld [vmem:[%s747_s4] ss:$0 sm:$0xff] }
  0x1e   :  { %489 = vmatprep.subr.bf16.mxu1 %v539_v29  ;;  %v477_v19 = vld [vmem:[%s748_s5] ss:$0 sm:$0xff]  ;;  %p556_p3 = por %p555_p2, %p554_p1 }
  0x1f   :  { %160 = vmatpush1.bf16.msra.mxu0 %v528_v25  ;;  %v58_v41 = vrot.slane %v53_v39, %v57_v38  ;;  %v62_v42 = vrot.slane %v53_v39, %v61_v40  ;;  %v478_v21 = vld [vmem:[%s749_s6] ss:$0 sm:$0xff] }
  0x20   :  { %p557_p4 = pnand %p556_p3, %p550_p0 }
  0x21   :  { %490 = vmatpush3.bf16.msra.mxu1 %v540_v31 }
  0x22   :  { %178 = vmatmul.mubr.bf16.vlgmr.msra.gmra.mrb[0].mxu0 %v36_v30  ;;  %491 = vmatprep.subr.bf16.mxu1 %v541_v32 }
  0x25   :  { %492 = vmatpush3.bf16.msra.mxu1 %v542_v33 }
  0x26   :  { %493 = vmatprep.subr.bf16.mxu1 %v543_v34 }
  0x29   :  { %494 = vmatpush3.bf16.msra.mxu1 %v544_v35 }
  0xf5   :  { %v179_v43 = vpop.f32.mrb[0].mxu0 }
  0xf6   :  { %v180_v44 = vadd.f32 %v179_v43, %v58_v41  ;;  %v181_v45 = vpop.f32.mrb[1].mxu0 }
  0xf7   :  { %v182_v46 = vadd.f32 %v181_v45, %v62_v42  ;;  %v183_v47 = vpop.f32.mrb[2].mxu0 }
  0xf8   :  { %v184_v48 = vadd.f32 %v183_v47, %v58_v41  ;;  %v185_v49 = vpop.f32.mrb[3].mxu0  ;;  %v188_v51 = vmax.f32 %v180_v44, 0.0 }
  0xf9   :  { %v186_v50 = vadd.f32 %v185_v49, %v62_v42  ;;  %v189_v53 = vmax.f32 %v182_v46, 0.0 }
  0xfa   :  { %v190_v52 = vmax.f32 %v184_v48, 0.0 }
  0xfb   :  { %v191_v54 = vmax.f32 %v186_v50, 0.0 }
  0xfc   :  { %v194_v55 = vpack.c.bf16 %v190_v52, %v188_v51 }
  0xfd   :  { %v195_v56 = vpack.c.bf16 %v191_v54, %v189_v53 }
  0xff   :  { %356 = vmatprep.mubr.bf16.mxu1 %v195_v56 }
 0x100   :  { %357 = vmatmul.mubr.bf16.vlgmr.msra.gmra.mrb[0].mxu1 %v194_v55 }
 0x1d3   :  { %v495_v57 = vpop.f32.mrb[0].mxu1 }
 0x1d4   :  { %v496_v58 = vpop.f32.mrb[1].mxu1 }
 0x1d5   :  { %v497_v60 = vadd.f32 %v496_v58, %v495_v57  ;;  %v498_v61 = vpop.f32.mrb[2].mxu1 }
 0x1d6   :  { %v499_v62 = vpop.f32.mrb[3].mxu1 }
 0x1d7   :  { %v381_v63 = vadd.f32 %v497_v60, %v476_v59  ;;  %v500_v0 = vadd.f32 %v499_v62, %v498_v61 }
 0x1d9   :  { %v382_v1 = vadd.f32 %v500_v0, %v476_v59  ;;  %v383_v2 = vadd.f32 %v381_v63, %v34_v26 }
 0x1db   :  { %385 = vadd.xlane.f32.xlu0 %v383_v2  ;;  %v384_v3 = vadd.f32 %v382_v1, %v35_v27 }
 0x1df   :  { %387 = vadd.xlane.f32.xlu0 %v384_v3 }
 0x268   :  { %v386_v4 = vpop.xlane.xlu0 %385 }
 0x269   :  { %v390_v5 = vmul.f32 0.0078125, %v386_v4 }
 0x26b   :  { %v392_v6 = vsub.f32 %v383_v2, %v390_v5 }
 0x26c   :  { %v388_v7 = vpop.xlane.xlu0 %387 }
 0x26d   :  { %v391_v8 = vmul.f32 0.0078125, %v388_v7  ;;  %v394_v9 = vmul.f32 %v392_v6, %v392_v6 }
 0x26f   :  { %v393_v10 = vsub.f32 %v384_v3, %v391_v8  ;;  %396 = vadd.xlane.f32.xlu1 %v394_v9 }
 0x271   :  { %v395_v11 = vmul.f32 %v393_v10, %v393_v10 }
 0x273   :  { %398 = vadd.xlane.f32.xlu1 %v395_v11 }
 0x2fc   :  { %v397_v12 = vpop.xlane.xlu1 %396 }
 0x2fd   :  { %v400_v13 = vmul.f32 0.0078125, %v397_v12 }
 0x2ff   :  { %v402_v14 = vadd.f32 1e-05, %v400_v13 }
 0x300   :  { %v399_v15 = vpop.xlane.xlu1 %398 }
 0x301   :  { %545 = vrsqrt.f32 %v402_v14  ;;  %v401_v16 = vmul.f32 0.0078125, %v399_v15 }
 0x303   :  { %v403_v17 = vadd.f32 1e-05, %v401_v16 }
 0x305   :  { %547 = vrsqrt.f32 %v403_v17 }
 0x30b   :  { %v546_v18 = vpop.eup %545 }
 0x30c   :  { %v406_v20 = vmul.f32 %v546_v18, %v392_v6 }
 0x30e   :  { %v415_v22 = vmul.f32 %v477_v19, %v406_v20 }
 0x30f   :  { %v548_v23 = vpop.eup %547 }
 0x310   :  { %v407_v24 = vmul.f32 %v548_v23, %v393_v10  ;;  %v424_v25 = vadd.f32 %v478_v21, %v415_v22 }
 0x312   :  { %v416_v26 = vmul.f32 %v477_v19, %v407_v24  ;;  %426 = vst [vmem:[#allocation3] sm:$0xff] %v424_v25 }
 0x314   :  { %v425_v27 = vadd.f32 %v478_v21, %v416_v26 }
 0x316   :  { %427 = vst [vmem:[#allocation3 + $0x8] sm:$0xff] %v425_v27 }
 0x317   :  { %560 = shalt.err (!%p557_p4)
}
 0x318   :  { %s561_s29 = scalar_lea.hbm %s750_s7, 256 }
 0x319   :  { %p562_p5 = scmp.ne.s32.totalorder %s750_s7, %s561_s29  ;;  %p565_p6 = scmp.lt.u32.totalorder %s561_s29, %s750_s7 }
 0x31b   :  { %p567_p7 = pnand %p565_p6, %p562_p5 }
 0x31d   :  { %570 = shalt.err (!%p567_p7)
}
 0x31e   :  { %s575_s11 = smov 128   ;;  %s576_s12 = smov 8  }
 0x31f   :  { %439 = dma.vmem_to_hbm [thread:$0]  %s434_s27, 256, %s750_s7, [#allocation4], %s575_s11, %s575_s11, %s576_s12  }
 0x320   :  { %571 = dma.done.wait [#allocation4], 256  }
 0x321   :  { %572 = vsyncadd [#allocation4], 4294967040 }
 0x322   :  { %443 = vsyncpa [#allocation4], 1 }

</bundles_post_ra>
